<compile_context>
chip_gen: v7x
topology: tpu7x:2x2x1
jax: 0.10.0
libtpu: 0.0.40
codegen_flags: <defaults>
</compile_context>

<pallas_src>
import functools
import math
import numpy as np
import jax
import jax.numpy as jnp
from jax.experimental import pallas as pl
from jax.experimental.pallas import tpu as pltpu


# ----------------------- weight standardization (Pallas, VPU) -----------------------

def _ws_kernel(K, rho, w_ref, o_ref):
    # WSConv2d.forward: per-output-channel mean subtraction, unbiased std (ddof=1),
    # "std + 1e-5" in the denominator, scale by rho.  Math in f32, stored as bf16
    # because the standardized weight is an MXU operand downstream.
    w = w_ref[...]
    mean = jnp.mean(w, axis=1, keepdims=True)
    c = w - mean
    var = jnp.sum(c * c, axis=1, keepdims=True) * (1.0 / (K - 1))
    std = jnp.sqrt(var) + 1e-5
    o_ref[...] = ((c / std) * rho).astype(o_ref.dtype)


@functools.lru_cache(maxsize=None)
def _get_ws_call(cout, K, rho):
    tc = cout if cout <= 128 else 128
    assert cout % tc == 0
    return pl.pallas_call(
        functools.partial(_ws_kernel, K, rho),
        out_shape=jax.ShapeDtypeStruct((cout, K), jnp.bfloat16),
        grid=(cout // tc,),
        in_specs=[pl.BlockSpec((tc, K), lambda i: (i, 0))],
        out_specs=pl.BlockSpec((tc, K), lambda i: (i, 0)),
        compiler_params=pltpu.CompilerParams(dimension_semantics=("parallel",)),
    )


def ws_standardize(weight, rho):
    cout = weight.shape[0]
    K = int(np.prod(weight.shape[1:]))
    w_mat = weight.reshape(cout, K).astype(jnp.float32)
    return _get_ws_call(cout, K, float(rho))(w_mat)        # (Cout, Cin*kh*kw) bf16


# -------------- fused WSConv2d + GroupNorm(+residual+ReLU) (Pallas, MXU+VPU) --------------

def _conv_gn_kernel(taps, Mk, Ho, Wo, Wq, groups, eps, relu, has_res, Bn, *refs):
    # x_ref : (Bn, P, Lp, Cin) bf16 -- padded activation, phase-decomposed for stride>1
    #         and flattened over (H, W) so every kernel tap is a contiguous row window
    #         [st, st+Mk) of one phase grid.
    # w_ref : (kh*kw, Cin, tn) bf16 standardized weights (tn <= 256 output channels).
    # g_ref/b_ref : (1, tn) f32 GroupNorm affine params for this channel tile.
    # r_ref : (Bn, Ho*Wo, tn) bf16 residual (optional).
    # o_ref : (Bn, Ho*Wo, tn) bf16 -- compacted (garbage Wq-Wo columns never stored).
    if has_res:
        x_ref, w_ref, g_ref, b_ref, r_ref, o_ref = refs
    else:
        x_ref, w_ref, g_ref, b_ref, o_ref = refs
        r_ref = None
    tn = o_ref.shape[-1]
    gamma = g_ref[...]
    beta = b_ref[...]
    padded = Wq != Wo
    if padded:
        colrem = jax.lax.broadcasted_iota(jnp.int32, (Mk, 1), 0) % Wq
        valid = colrem < Wo                       # row m valid iff (m % Wq) < Wo
    cidx = jax.lax.broadcasted_iota(jnp.int32, (1, tn), 1)
    cnt = float(Ho * Wo)

    for b in range(Bn):
        # ---- conv: tap-accumulated bf16 MXU matmuls into an f32 accumulator ----
        acc = None
        for t, (pi, st) in enumerate(taps):
            lhs = x_ref[b, pi, st:st + Mk, :]              # bf16, no per-tap cast
            d = jnp.dot(lhs, w_ref[t], preferred_element_type=jnp.float32)
            acc = d if acc is None else acc + d            # (Mk, tn) f32
        # TODO(synk): for Cin<256 concatenate taps along the contraction dim so each
        #             jnp.dot runs the 256-deep MXU closer to full depth.

        # ---- GroupNorm stats (two-pass, f32, garbage columns masked out) ----
        mean_c = jnp.zeros((1, tn), jnp.float32)
        inv_c = jnp.zeros((1, tn), jnp.float32)
        for c0, c1 in groups:                              # each tile holds whole groups
            denom = cnt * (c1 - c0)
            xg = acc[:, c0:c1]
            xg_m = jnp.where(valid, xg, 0.0) if padded else xg
            mean = jnp.sum(jnp.sum(xg_m, axis=0, keepdims=True),
                           axis=1, keepdims=True) / denom                  # (1,1)
            cen = xg - mean
            if padded:
                cen = jnp.where(valid, cen, 0.0)
            var = jnp.sum(jnp.sum(cen * cen, axis=0, keepdims=True),
                          axis=1, keepdims=True) / denom                   # (1,1)
            inv = jax.lax.rsqrt(var + eps)
            in_g = (cidx >= c0) & (cidx < c1)
            mean_c = jnp.where(in_g, mean, mean_c)
            inv_c = jnp.where(in_g, inv, inv_c)
        y = (acc - mean_c) * inv_c * gamma + beta          # (Mk, tn) f32

        # ---- epilogue: residual add + ReLU + compacted bf16 store (garbage stripped) ----
        if not padded:
            if has_res:
                y = y + r_ref[b].astype(jnp.float32)
            if relu:
                y = jnp.maximum(y, 0.0)
            o_ref[b] = y.astype(o_ref.dtype)
        else:
            for oy in range(Ho):
                row = y[oy * Wq:oy * Wq + Wo, :]
                if has_res:
                    row = row + r_ref[b, oy * Wo:(oy + 1) * Wo, :].astype(jnp.float32)
                if relu:
                    row = jnp.maximum(row, 0.0)
                o_ref[b, oy * Wo:(oy + 1) * Wo, :] = row.astype(o_ref.dtype)


def _pick_bn(N, Mk, P, Lp, Cin, tn):
    # Block several samples per grid step on the small deep layers (per-step MXU work
    # there is below the per-step overhead), bounded by a VMEM / unroll budget.
    x_b = P * Lp * Cin * 2
    acc_b = Mk * tn * 4
    for cand in range(min(N, 8), 0, -1):
        if (N % cand == 0 and cand * x_b <= (4 << 20)
                and cand * acc_b <= (4 << 20) and cand * Mk <= 2048):
            return cand
    return 1


@functools.lru_cache(maxsize=None)
def _get_conv_gn_call(taps, N, Bn, P, Lp, Cin, Mk, Cout, tn, Ho, Wo, Wq,
                      groups, eps, relu, has_res):
    KK = len(taps)
    Mout = Ho * Wo
    in_specs = [pl.BlockSpec((Bn, P, Lp, Cin), lambda j, n: (n, 0, 0, 0)),
                # weight index depends only on the OUTER axis j -> resident across the
                # inner batch sweep (no per-sample weight re-DMA).
                pl.BlockSpec((KK, Cin, tn), lambda j, n: (0, 0, j)),
                pl.BlockSpec((1, tn), lambda j, n: (0, j)),
                pl.BlockSpec((1, tn), lambda j, n: (0, j))]
    if has_res:
        in_specs.append(pl.BlockSpec((Bn, Mout, tn), lambda j, n: (n, 0, j)))
    # Per-layer VMEM budget from actual block sizes (double-buffered) + f32 accumulator
    # headroom, clamped so it is safe on v7x (64 MiB physical VMEM).
    blk_bytes = (Bn * P * Lp * Cin * 2 + KK * Cin * tn * 2 + 2 * tn * 4
                 + Bn * Mout * tn * 2 * (2 if has_res else 1))
    vmem = int(min(56 << 20, max(32 << 20, 2 * blk_bytes + 4 * Mk * tn * 4 + (4 << 20))))
    return pl.pallas_call(
        functools.partial(_conv_gn_kernel, taps, Mk, Ho, Wo, Wq, groups, eps,
                          relu, has_res, Bn),
        out_shape=jax.ShapeDtypeStruct((N, Mout, Cout), jnp.bfloat16),
        grid=(Cout // tn, N // Bn),            # Cout-tile outer, batch inner
        in_specs=in_specs,
        out_specs=pl.BlockSpec((Bn, Mout, tn), lambda j, n: (n, 0, j)),
        compiler_params=pltpu.CompilerParams(
            dimension_semantics=("parallel", "parallel"),
            vmem_limit_bytes=vmem),
    )


def ws_conv_gn_forward(x_flat, H, W, weight, rho, stride, padding, gamma, beta,
                       residual=None, relu=False, num_groups=2, eps=1e-5):
    """Fused WSConv2d -> GroupNorm(num_groups) [-> +residual] [-> ReLU].

    x_flat is (N, H*W, Cin) bf16; returns ((N, Ho*Wo, Cout) bf16, Ho, Wo)."""
    N, _, Cin = x_flat.shape
    Cout, wcin, kh, kw = weight.shape
    assert wcin == Cin
    w_std = ws_standardize(weight, rho)                       # (Cout, Cin*kh*kw) bf16
    w_taps = (w_std.reshape(Cout, Cin, kh, kw)
                   .transpose(2, 3, 1, 0)
                   .reshape(kh * kw, Cin, Cout))

    x = x_flat.reshape(N, H, W, Cin)
    s = stride
    if kh == 1 and kw == 1 and s > 1:     # 1x1 strided conv == 1x1 conv on the subsample
        x = x[:, ::s, ::s, :]
        H, W = x.shape[1], x.shape[2]
        s = 1
    if padding:
        x = jnp.pad(x, ((0, 0), (padding, padding), (padding, padding), (0, 0)))
    Hp, Wp = H + 2 * padding, W + 2 * padding
    Ho = (Hp - kh) // s + 1
    Wo = (Wp - kw) // s + 1
    if s == 1:
        P, Hq, Wq = 1, Hp, Wp
        phases = x[:, None]                                   # (N, 1, Hp, Wp, Cin)
    else:
        # TODO(synk): fold pad + phase-stack into the kernel (strided pl.ds reads) to
        #             drop these plain-JAX HBM relayouts on the three stride-2 convs.
        P = s * s
        ph = [x[:, py::s, px::s, :] for py in range(s) for px in range(s)]
        assert len({p.shape for p in ph}) == 1, "stride-s conv needs Hp, Wp divisible by s"
        Hq, Wq = ph[0].shape[1], ph[0].shape[2]
        phases = jnp.stack(ph, axis=1)                        # (N, P, Hq, Wq, Cin)

    # Tap (dy, dx) -> phase index and flat row offset inside that phase grid.
    taps = tuple(((dy % s) * s + (dx % s), (dy // s) * Wq + (dx // s))
                 for dy in range(kh) for dx in range(kw))
    Mk = Ho * Wq                        # rows per tap slab (incl. Wq-Wo garbage cols)
    L = Hq * Wq
    Lp = max(L, max(st for _, st in taps) + Mk)
    flat = phases.reshape(N, P, L, Cin)
    if Lp > L:
        flat = jnp.pad(flat, ((0, 0), (0, 0), (0, Lp - L), (0, 0)))
    flat = flat.astype(jnp.bfloat16)

    tn = Cout if Cout <= 256 else 256
    # TODO(synk): make tn generation-aware (128 on v5e) via pltpu.get_tpu_info().
    assert Cout % tn == 0
    gs = Cout // num_groups
    assert tn % gs == 0, "GroupNorm group must be contained in one Cout tile"
    groups = tuple((i * gs, (i + 1) * gs) for i in range(tn // gs))

    Bn = _pick_bn(N, Mk, P, Lp, Cin, tn)
    has_res = residual is not None
    call = _get_conv_gn_call(taps, N, Bn, P, Lp, Cin, Mk, Cout, tn, Ho, Wo, Wq,
                             groups, float(eps), bool(relu), has_res)
    args = [flat, w_taps,
            gamma.reshape(1, Cout).astype(jnp.float32),
            beta.reshape(1, Cout).astype(jnp.float32)]
    if has_res:
        args.append(residual.astype(jnp.bfloat16))
    out = call(*args)                                         # (N, Ho*Wo, Cout) bf16
    return out, Ho, Wo


# ----------------------- global avg-pool & FC (Pallas) -----------------------

def _avgpool_kernel(x_ref, o_ref):
    o_ref[...] = jnp.mean(x_ref[...].astype(jnp.float32), axis=1)


@functools.lru_cache(maxsize=None)
def _get_avgpool_call(N, HW, C):
    return pl.pallas_call(
        _avgpool_kernel,
        out_shape=jax.ShapeDtypeStruct((N, C), jnp.float32),
        grid=(1,),
        in_specs=[pl.BlockSpec((N, HW, C), lambda i: (0, 0, 0))],
        out_specs=pl.BlockSpec((N, C), lambda i: (0, 0)),
    )


def pallas_global_avgpool(x):
    N, HW, C = x.shape
    return _get_avgpool_call(N, HW, C)(x)


def _fc_kernel(x_ref, w_ref, b_ref, o_ref):
    o_ref[...] = (jnp.dot(x_ref[...], w_ref[...], preferred_element_type=jnp.float32)
                  + b_ref[...])


@functools.lru_cache(maxsize=None)
def _get_fc_call(N, D, ncls):
    return pl.pallas_call(
        _fc_kernel,
        out_shape=jax.ShapeDtypeStruct((N, ncls), jnp.float32),
        grid=(1,),
        in_specs=[pl.BlockSpec((N, D), lambda i: (0, 0)),
                  pl.BlockSpec((D, ncls), lambda i: (0, 0)),
                  pl.BlockSpec((1, ncls), lambda i: (0, 0))],
        out_specs=pl.BlockSpec((N, ncls), lambda i: (0, 0)),
    )


def pallas_fc(x, w, b):
    N, D = x.shape
    ncls = w.shape[0]
    return _get_fc_call(N, D, ncls)(x, w.T, b.reshape(1, ncls))


# ----------------------- model forward (channel-last, flattened HW, bf16) -----------------------

def basic_block_forward(x, H, W, blk, rho):
    stride = blk['stride']
    # conv1 -> GN -> ReLU, fully fused.
    out, Ho, Wo = ws_conv_gn_forward(x, H, W, blk['conv1_w'], rho, stride, 1,
                                     blk['gn1_g'], blk['gn1_b'], relu=True)
    # shortcut path (fused 1x1 WSConv + GN, no ReLU) or identity.
    if 'sc_w' in blk:
        sc, _, _ = ws_conv_gn_forward(x, H, W, blk['sc_w'], rho, stride, 0,
                                      blk['sc_g'], blk['sc_b'], relu=False)
    else:
        sc = x
    # conv2 -> GN -> (+shortcut) -> ReLU, fully fused (residual consumed in the epilogue).
    out, Ho, Wo = ws_conv_gn_forward(out, Ho, Wo, blk['conv2_w'], rho, 1, 1,
                                     blk['gn2_g'], blk['gn2_b'],
                                     residual=sc, relu=True)
    return out, Ho, Wo


def resnet_ws_forward(params, x_nchw, rho=0.001, return_feature=False):
    # Single NCHW -> NHWC transpose at the input; everything after stays channel-last bf16.
    N, C, H, W = x_nchw.shape
    out = jnp.transpose(x_nchw, (0, 2, 3, 1)).reshape(N, H * W, C).astype(jnp.bfloat16)
    out, H, W = ws_conv_gn_forward(out, H, W, params['conv1_w'], rho, 1, 1,
                                   params['bn1_g'], params['bn1_b'], relu=True)
    for stage in params['layers']:
        for blk in stage:
            out, H, W = basic_block_forward(out, H, W, blk, rho)
    feat = pallas_global_avgpool(out)                           # (N, 512) f32
    logit = pallas_fc(feat, params['fc_w'], params['fc_b'])     # (N, num_classes)
    if return_feature:
        return feat, logit
    return logit


# ----------------------- parameter init (matches the PyTorch module) -----------------------

def _kaiming_uniform(key, shape):
    fan_in = int(np.prod(shape[1:]))
    bound = math.sqrt(6.0 / fan_in)
    return jax.random.uniform(key, shape, jnp.float32, -bound, bound)


def init_resnet_ws_params(key, num_blocks=(2, 2, 2, 2), num_classes=10, last_feature_dim=512):
    params = {}
    keys = iter(jax.random.split(key, 64))
    params['conv1_w'] = _kaiming_uniform(next(keys), (64, 3, 3, 3))
    params['bn1_g'] = jnp.ones((64,), jnp.float32)
    params['bn1_b'] = jnp.zeros((64,), jnp.float32)
    in_planes = 64
    planes_list = (64, 128, 256, last_feature_dim)
    stage_strides = (1, 2, 2, 2)
    layers = []
    for planes, first_stride, nblk in zip(planes_list, stage_strides, num_blocks):
        stage = []
        for b in range(nblk):
            stride = first_stride if b == 0 else 1
            blk = {
                'stride': stride,
                'conv1_w': _kaiming_uniform(next(keys), (planes, in_planes, 3, 3)),
                'gn1_g': jnp.ones((planes,), jnp.float32),
                'gn1_b': jnp.zeros((planes,), jnp.float32),
                'conv2_w': _kaiming_uniform(next(keys), (planes, planes, 3, 3)),
                'gn2_g': jnp.ones((planes,), jnp.float32),
                'gn2_b': jnp.zeros((planes,), jnp.float32),
            }
            if stride != 1 or in_planes != planes:
                blk['sc_w'] = _kaiming_uniform(next(keys), (planes, in_planes, 1, 1))
                blk['sc_g'] = jnp.ones((planes,), jnp.float32)
                blk['sc_b'] = jnp.zeros((planes,), jnp.float32)
            stage.append(blk)
            in_planes = planes
        layers.append(stage)
    params['layers'] = layers
    bound = 1.0 / math.sqrt(last_feature_dim)
    params['fc_w'] = jax.random.uniform(next(keys), (num_classes, last_feature_dim),
                                        jnp.float32, -bound, bound)
    params['fc_b'] = jax.random.uniform(next(keys), (num_classes,),
                                        jnp.float32, -bound, bound)
    return params


if __name__ == "__main__":
    key = jax.random.PRNGKey(0)
    pkey, xkey = jax.random.split(key)
    # ResNet_WSConv(BasicBlock, [2,2,2,2], num_classes=10, use_bn_layer=False) — GroupNorm path.
    params = init_resnet_ws_params(pkey, num_blocks=(2, 2, 2, 2), num_classes=10)
    x = jax.random.normal(xkey, (2, 3, 16, 16), jnp.float32)   # NCHW, 3-channel CIFAR-like
    logit = resnet_ws_forward(params, x, rho=0.001)
    logit = jax.block_until_ready(logit)
    assert logit.shape == (2, 10)
    assert bool(jnp.all(jnp.isfinite(logit)))
    print("KERNEL_OK")
</pallas_src>

<mosaic_0001>
module attributes {stable_mosaic.version = 11 : i64} {
  func.func @_ws_kernel(%arg0: i32, %arg1: memref<64x27xf32, #tpu.memory_space<vmem>>, %arg2: memref<64x27xbf16, #tpu.memory_space<vmem>>) attributes {dimension_semantics = [#tpu.dimension_semantics<parallel>], iteration_bounds = array<i64: 1>, scalar_prefetch = 0 : i64, scratch_operands = 0 : i64, tpu.core_type = #tpu.core_type<tc>, window_params = [{transform_indices = @transform_0, window_bounds = array<i64: 64, 27>}, {transform_indices = @transform_1, window_bounds = array<i64: 64, 27>}]} {
    %c0 = arith.constant 0 : index
    %c0_0 = arith.constant 0 : index
    %0 = vector.load %arg1[%c0, %c0_0] : memref<64x27xf32, #tpu.memory_space<vmem>>, vector<64x27xf32>
    %cst = arith.constant dense<0.000000e+00> : vector<64xf32>
    %1 = vector.multi_reduction <add>, %0, %cst [1] : vector<64x27xf32> to vector<64xf32>
    %2 = vector.shape_cast %1 : vector<64xf32> to vector<64x1xf32>
    %cst_1 = arith.constant 2.700000e+01 : f32
    %3 = vector.broadcast %cst_1 : f32 to vector<64x1xf32>
    %4 = arith.divf %2, %3 : vector<64x1xf32>
    %5 = vector.broadcast %4 : vector<64x1xf32> to vector<64x27xf32>
    %6 = arith.subf %0, %5 : vector<64x27xf32>
    %7 = arith.mulf %6, %6 : vector<64x27xf32>
    %cst_2 = arith.constant dense<0.000000e+00> : vector<64xf32>
    %8 = vector.multi_reduction <add>, %7, %cst_2 [1] : vector<64x27xf32> to vector<64xf32>
    %9 = vector.shape_cast %8 : vector<64xf32> to vector<64x1xf32>
    %cst_3 = arith.constant 0.0384615399 : f32
    %10 = vector.broadcast %cst_3 : f32 to vector<64x1xf32>
    %11 = arith.mulf %9, %10 : vector<64x1xf32>
    %12 = math.sqrt %11 : vector<64x1xf32>
    %cst_4 = arith.constant 9.99999974E-6 : f32
    %13 = vector.broadcast %cst_4 : f32 to vector<64x1xf32>
    %14 = arith.addf %12, %13 : vector<64x1xf32>
    %15 = vector.broadcast %14 : vector<64x1xf32> to vector<64x27xf32>
    %16 = arith.divf %6, %15 : vector<64x27xf32>
    %cst_5 = arith.constant 1.000000e-03 : f32
    %17 = vector.broadcast %cst_5 : f32 to vector<64x27xf32>
    %18 = arith.mulf %16, %17 : vector<64x27xf32>
    %19 = arith.truncf %18 : vector<64x27xf32> to vector<64x27xbf16>
    %c0_6 = arith.constant 0 : index
    %c0_7 = arith.constant 0 : index
    %20 = vector.load %arg2[%c0_6, %c0_7] : memref<64x27xbf16, #tpu.memory_space<vmem>>, vector<64x27xbf16>
    tpu.vector_store %arg2[%c0_6, %c0_7], %19 {strides = array<i32>} : memref<64x27xbf16, #tpu.memory_space<vmem>>, vector<64x27xbf16>,
    return
  }
  func.func @transform_0(%arg0: i32) -> (i32, i32) {
    %c0_i32 = arith.constant 0 : i32
    %c0_i32_0 = arith.constant 0 : i32
    return %arg0, %c0_i32 : i32, i32
  }
  func.func @transform_1(%arg0: i32) -> (i32, i32) {
    %c0_i32 = arith.constant 0 : i32
    %c0_i32_0 = arith.constant 0 : i32
    return %arg0, %c0_i32 : i32, i32
  }
}

</mosaic_0001>

<bundles_post_ra>
// kernel: tpu_custom_call.1
= control target key start
LH: loop header
LB: loop body
LE: loop exit
PB: predicated region body
PF: predicated region fallthrough
CT: control target
= control target key end

     0   :  { %vm16_vm0 = vcmask 220160   ;;  %s425_s0 = inlined_call_operand.vmem [shape: f32[64,27], index: 0, kind: input, shape index: {}]   ;;  %s426_s1 = inlined_call_operand.vmem [shape: bf16[64,27], index: 1, kind: output, shape index: {}]  }
   0x1   :  { %v8_v0 = vld [vmem:[%s425_s0] sm:$0xff]  ;;  %v10_v1 = vld [vmem:[%s425_s0 + $0x10] sm:$0xff]  ;;  %v9_v2 = vld [vmem:[%s425_s0 + $0x8] sm:$0xff] }
   0x2   :  { %v17_v3 = vsel %vm16_vm0, %v8_v0, 0.0  ;;  %v23_v4 = vsel %vm16_vm0, %v10_v1, 0.0  ;;  %v11_v5 = vld [vmem:[%s425_s0 + $0x18] sm:$0xff]  ;;  %v20_v6 = vsel %vm16_vm0, %v9_v2, 0.0  ;;  %v12_v8 = vld [vmem:[%s425_s0 + $0x20] sm:$0xff]  ;;  %v13_v9 = vld [vmem:[%s425_s0 + $0x28] sm:$0xff] }
   0x3   :  { %18 = vadd.xlane.f32.xlu0 %v17_v3  ;;  %24 = vadd.xlane.f32.xlu1 %v23_v4  ;;  %v26_v7 = vsel %vm16_vm0, %v11_v5, 0.0  ;;  %v29_v10 = vsel %vm16_vm0, %v12_v8, 0.0  ;;  %v32_v11 = vsel %vm16_vm0, %v13_v9, 0.0  ;;  %v14_v12 = vld [vmem:[%s425_s0 + $0x30] sm:$0xff]  ;;  %v15_v13 = vld [vmem:[%s425_s0 + $0x38] sm:$0xff] }
   0x4   :  { %v35_v14 = vsel %vm16_vm0, %v14_v12, 0.0  ;;  %v38_v15 = vsel %vm16_vm0, %v15_v13, 0.0 }
   0x7   :  { %21 = vadd.xlane.f32.xlu0 %v20_v6  ;;  %27 = vadd.xlane.f32.xlu1 %v26_v7 }
   0xb   :  { %30 = vadd.xlane.f32.xlu0 %v29_v10  ;;  %33 = vadd.xlane.f32.xlu1 %v32_v11 }
   0xf   :  { %36 = vadd.xlane.f32.xlu0 %v35_v14  ;;  %39 = vadd.xlane.f32.xlu1 %v38_v15 }
  0x90   :  { %v19_v16 = vpop.xlane.xlu0 %18  ;;  %v25_v17 = vpop.xlane.xlu1 %24 }
  0x91   :  { %v42_v18 = vmul.f32 0.037037037, %v19_v16  ;;  %v44_v19 = vmul.f32 0.037037037, %v25_v17 }
  0x93   :  { %v321_v20 = vsub.f32 %v8_v0, %v42_v18  ;;  %v323_v21 = vsub.f32 %v10_v1, %v44_v19 }
  0x94   :  { %v22_v22 = vpop.xlane.xlu0 %21  ;;  %v28_v23 = vpop.xlane.xlu1 %27 }
  0x95   :  { %v43_v24 = vmul.f32 0.037037037, %v22_v22  ;;  %v45_v25 = vmul.f32 0.037037037, %v28_v23  ;;  %v58_v26 = vmul.f32 %v321_v20, %v321_v20  ;;  %v60_v27 = vmul.f32 %v323_v21, %v323_v21 }
  0x97   :  { %v329_v28 = vsub.f32 %v9_v2, %v43_v24  ;;  %v331_v29 = vsub.f32 %v11_v5, %v45_v25  ;;  %v66_v30 = vsel %vm16_vm0, %v58_v26, 0.0  ;;  %v72_v33 = vsel %vm16_vm0, %v60_v27, 0.0 }
  0x98   :  { %67 = vadd.xlane.f32.xlu0 %v66_v30  ;;  %v31_v31 = vpop.xlane.xlu0 %30  ;;  %v34_v32 = vpop.xlane.xlu1 %33 }
  0x99   :  { %v46_v34 = vmul.f32 0.037037037, %v31_v31  ;;  %v47_v35 = vmul.f32 0.037037037, %v34_v32  ;;  %v59_v36 = vmul.f32 %v329_v28, %v329_v28  ;;  %v61_v37 = vmul.f32 %v331_v29, %v331_v29 }
  0x9b   :  { %v339_v38 = vsub.f32 %v12_v8, %v46_v34  ;;  %v341_v39 = vsub.f32 %v13_v9, %v47_v35  ;;  %v69_v40 = vsel %vm16_vm0, %v59_v36, 0.0  ;;  %v75_v43 = vsel %vm16_vm0, %v61_v37, 0.0 }
  0x9c   :  { %73 = vadd.xlane.f32.xlu0 %v72_v33  ;;  %70 = vadd.xlane.f32.xlu1 %v69_v40  ;;  %v37_v41 = vpop.xlane.xlu0 %36  ;;  %v40_v42 = vpop.xlane.xlu1 %39 }
  0x9d   :  { %v48_v44 = vmul.f32 0.037037037, %v37_v41  ;;  %v49_v45 = vmul.f32 0.037037037, %v40_v42  ;;  %v62_v46 = vmul.f32 %v339_v38, %v339_v38  ;;  %v63_v47 = vmul.f32 %v341_v39, %v341_v39 }
  0x9f   :  { %v349_v48 = vsub.f32 %v14_v12, %v48_v44  ;;  %v351_v49 = vsub.f32 %v15_v13, %v49_v45  ;;  %v78_v50 = vsel %vm16_vm0, %v62_v46, 0.0  ;;  %v81_v51 = vsel %vm16_vm0, %v63_v47, 0.0 }
  0xa0   :  { %76 = vadd.xlane.f32.xlu1 %v75_v43  ;;  %79 = vadd.xlane.f32.xlu0 %v78_v50 }
  0xa1   :  { %v64_v52 = vmul.f32 %v349_v48, %v349_v48  ;;  %v65_v53 = vmul.f32 %v351_v49, %v351_v49 }
  0xa3   :  { %v84_v54 = vsel %vm16_vm0, %v64_v52, 0.0  ;;  %v87_v55 = vsel %vm16_vm0, %v65_v53, 0.0 }
  0xa4   :  { %82 = vadd.xlane.f32.xlu1 %v81_v51  ;;  %85 = vadd.xlane.f32.xlu0 %v84_v54 }
  0xa8   :  { %88 = vadd.xlane.f32.xlu1 %v87_v55 }
 0x125   :  { %v68_v56 = vpop.xlane.xlu0 %67 }
 0x126   :  { %v90_v57 = vmul.f32 0.03846154, %v68_v56 }
 0x128   :  { %247 = vrsqrt.f32 %v90_v57  ;;  %vm100_vm1 = vcmp.eq.f32.partialorder %v90_v57, inf  ;;  %v103_v8 = vand.u32 2147483648, %v90_v57  ;;  %vm102_vm2 = vcmp.eq.f32.partialorder %v90_v57, 0.0 }
 0x129   :  { %v71_v58 = vpop.xlane.xlu1 %70  ;;  %v74_v59 = vpop.xlane.xlu0 %73 }
 0x12a   :  { %v91_v60 = vmul.f32 0.03846154, %v71_v58  ;;  %v92_v61 = vmul.f32 0.03846154, %v74_v59 }
 0x12c   :  { %249 = vrsqrt.f32 %v91_v60  ;;  %vm107_vm3 = vcmp.eq.f32.partialorder %v91_v60, inf  ;;  %vm109_vm4 = vcmp.eq.f32.partialorder %v91_v60, 0.0  ;;  %v110_v17 = vand.u32 2147483648, %v91_v60 }
 0x12d   :  { %251 = vrsqrt.f32 %v92_v61  ;;  %v77_v62 = vpop.xlane.xlu1 %76  ;;  %v80_v63 = vpop.xlane.xlu0 %79  ;;  %vm114_vm5 = vcmp.eq.f32.partialorder %v92_v61, inf  ;;  %v117_v22 = vand.u32 2147483648, %v92_v61  ;;  %vm116_vm6 = vcmp.eq.f32.partialorder %v92_v61, 0.0 }
 0x12e   :  { %v93_v0 = vmul.f32 0.03846154, %v77_v62  ;;  %v94_v1 = vmul.f32 0.03846154, %v80_v63 }
 0x130   :  { %253 = vrsqrt.f32 %v93_v0  ;;  %vm121_vm7 = vcmp.eq.f32.partialorder %v93_v0, inf  ;;  %vm123_vm8 = vcmp.eq.f32.partialorder %v93_v0, 0.0  ;;  %v124_v33 = vand.u32 2147483648, %v93_v0 }
 0x131   :  { %255 = vrsqrt.f32 %v94_v1  ;;  %v83_v2 = vpop.xlane.xlu1 %82  ;;  %v86_v3 = vpop.xlane.xlu0 %85  ;;  %vm128_vm9 = vcmp.eq.f32.partialorder %v94_v1, inf  ;;  %v131_v36 = vand.u32 2147483648, %v94_v1  ;;  %vm130_vm10 = vcmp.eq.f32.partialorder %v94_v1, 0.0 }
 0x132   :  { %v248_v4 = vpop.eup %247  ;;  %v361_v5 = vmul.f32 0.03846154, %v83_v2  ;;  %v363_v6 = vmul.f32 0.03846154, %v86_v3 }
 0x133   :  { %v99_v7 = vmul.f32 %v248_v4, %v90_v57 }
 0x134   :  { %257 = vrsqrt.f32 %v361_v5  ;;  %vm135_vm11 = vcmp.eq.f32.partialorder %v361_v5, inf  ;;  %vm137_vm12 = vcmp.eq.f32.partialorder %v361_v5, 0.0  ;;  %v138_v47 = vand.u32 2147483648, %v361_v5 }
 0x135   :  { %v101_v9 = vsel %vm100_vm1, %v90_v57, %v99_v7  ;;  %259 = vrsqrt.f32 %v363_v6  ;;  %v89_v10 = vpop.xlane.xlu1 %88  ;;  %vm142_vm13 = vcmp.eq.f32.partialorder %v363_v6, inf  ;;  %v145_v52 = vand.u32 2147483648, %v363_v6 }
 0x136   :  { %v250_v11 = vpop.eup %249  ;;  %v104_v12 = vsel %vm102_vm2, %v103_v8, %v101_v9  ;;  %v367_v13 = vmul.f32 0.03846154, %v89_v10  ;;  %vm144_vm14 = vcmp.eq.f32.partialorder %v363_v6, 0.0  ;;  %vm218_vm1 = vcmask 216064  }
 0x137   :  { %v252_v14 = vpop.eup %251  ;;  %v154_v15 = vadd.f32 1e-05, %v104_v12  ;;  %v106_v16 = vmul.f32 %v250_v11, %v91_v60 }
 0x138   :  { %v113_v18 = vmul.f32 %v252_v14, %v92_v61  ;;  %261 = vrsqrt.f32 %v367_v13  ;;  %vm149_vm15 = vcmp.eq.f32.partialorder %v367_v13, inf  ;;  %v152_v62 = vand.u32 2147483648, %v367_v13 }
 0x139   :  { %263 = vrcp.f32 %v154_v15  ;;  %v108_v19 = vsel %vm107_vm3, %v91_v60, %v106_v16  ;;  %vm151_vm0 = vcmp.eq.f32.partialorder %v367_v13, 0.0 }
 0x13a   :  { %v254_v23 = vpop.eup %253  ;;  %v111_v24 = vsel %vm109_vm4, %v110_v17, %v108_v19  ;;  %v115_v25 = vsel %vm114_vm5, %v92_v61, %v113_v18 }
 0x13b   :  { %v256_v26 = vpop.eup %255  ;;  %v155_v27 = vadd.f32 1e-05, %v111_v24  ;;  %v118_v30 = vsel %vm116_vm6, %v117_v22, %v115_v25  ;;  %v120_v31 = vmul.f32 %v254_v23, %v93_v0 }
 0x13c   :  { %v156_v32 = vadd.f32 1e-05, %v118_v30  ;;  %v127_v34 = vmul.f32 %v256_v26, %v94_v1 }
 0x13d   :  { %265 = vrcp.f32 %v155_v27  ;;  %v122_v35 = vsel %vm121_vm7, %v93_v0, %v120_v31 }
 0x13e   :  { %v258_v37 = vpop.eup %257  ;;  %267 = vrcp.f32 %v156_v32  ;;  %v125_v40 = vsel %vm123_vm8, %v124_v33, %v122_v35  ;;  %v129_v41 = vsel %vm128_vm9, %v94_v1, %v127_v34 }
 0x13f   :  { %v260_v42 = vpop.eup %259  ;;  %v157_v43 = vadd.f32 1e-05, %v125_v40  ;;  %v132_v44 = vsel %vm130_vm10, %v131_v36, %v129_v41  ;;  %v134_v45 = vmul.f32 %v258_v37, %v361_v5 }
 0x140   :  { %v158_v46 = vadd.f32 1e-05, %v132_v44  ;;  %v141_v50 = vmul.f32 %v260_v42, %v363_v6 }
 0x141   :  { %269 = vrcp.f32 %v157_v43  ;;  %v136_v51 = vsel %vm135_vm11, %v361_v5, %v134_v45 }
 0x142   :  { %v262_v53 = vpop.eup %261  ;;  %271 = vrcp.f32 %v158_v46  ;;  %v139_v54 = vsel %vm137_vm12, %v138_v47, %v136_v51  ;;  %v143_v55 = vsel %vm142_vm13, %v363_v6, %v141_v50 }
 0x143   :  { %v264_v56 = vpop.eup %263  ;;  %v159_v57 = vadd.f32 1e-05, %v139_v54  ;;  %v146_v58 = vsel %vm144_vm14, %v145_v52, %v143_v55  ;;  %v148_v59 = vmul.f32 %v262_v53, %v367_v13 }
 0x144   :  { %v163_v60 = vmul.f32 %v264_v56, %v321_v20  ;;  %v160_v61 = vadd.f32 1e-05, %v146_v58 }
 0x145   :  { %273 = vrcp.f32 %v159_v57  ;;  %v150_v63 = vsel %vm149_vm15, %v367_v13, %v148_v59 }
 0x146   :  { %v178_v0 = vmul.f32 0.001, %v163_v60  ;;  %275 = vrcp.f32 %v160_v61  ;;  %v153_v1 = vsel %vm151_vm0, %v152_v62, %v150_v63 }
 0x147   :  { %v266_v2 = vpop.eup %265  ;;  %v161_v3 = vadd.f32 1e-05, %v153_v1 }
 0x148   :  { %v268_v4 = vpop.eup %267  ;;  %v239_v5 = vpack.c.bf16 %v178_v0, %v178_v0  ;;  %v165_v20 = vmul.f32 %v266_v2, %v329_v28 }
 0x149   :  { %v167_v6 = vmul.f32 %v268_v4, %v323_v21  ;;  %277 = vrcp.f32 %v161_v3 }
 0x14a   :  { %219 = vst.msk [vmem:[%s426_s1] sm:$0xf] %vm218_vm1, %v239_v5  ;;  %v179_v7 = vmul.f32 0.001, %v165_v20 }
 0x14b   :  { %v270_v8 = vpop.eup %269  ;;  %v180_v9 = vmul.f32 0.001, %v167_v6 }
 0x14c   :  { %v272_v10 = vpop.eup %271  ;;  %v240_v11 = vpack.c.bf16 %v179_v7, %v179_v7  ;;  %v169_v12 = vmul.f32 %v270_v8, %v331_v29 }
 0x14d   :  { %v241_v13 = vpack.c.bf16 %v180_v9, %v180_v9  ;;  %v171_v14 = vmul.f32 %v272_v10, %v339_v38 }
 0x14e   :  { %220 = vst.msk [vmem:[%s426_s1 + $0x4] sm:$0xf] %vm218_vm1, %v240_v11  ;;  %v181_v21 = vmul.f32 0.001, %v169_v12 }
 0x14f   :  { %v274_v28 = vpop.eup %273  ;;  %221 = vst.msk [vmem:[%s426_s1 + $0x8] sm:$0xf] %vm218_vm1, %v241_v13  ;;  %v182_v15 = vmul.f32 0.001, %v171_v14 }
 0x150   :  { %v276_v16 = vpop.eup %275  ;;  %v242_v17 = vpack.c.bf16 %v181_v21, %v181_v21  ;;  %v173_v29 = vmul.f32 %v274_v28, %v341_v39 }
 0x151   :  { %v243_v18 = vpack.c.bf16 %v182_v15, %v182_v15  ;;  %v175_v38 = vmul.f32 %v276_v16, %v349_v48 }
 0x152   :  { %222 = vst.msk [vmem:[%s426_s1 + $0xc] sm:$0xf] %vm218_vm1, %v242_v17  ;;  %v183_v19 = vmul.f32 0.001, %v173_v29 }
 0x153   :  { %v278_v22 = vpop.eup %277  ;;  %223 = vst.msk [vmem:[%s426_s1 + $0x10] sm:$0xf] %vm218_vm1, %v243_v18  ;;  %v184_v23 = vmul.f32 0.001, %v175_v38 }
 0x154   :  { %v244_v24 = vpack.c.bf16 %v183_v19, %v183_v19  ;;  %v177_v25 = vmul.f32 %v278_v22, %v351_v49 }
 0x155   :  { %v245_v39 = vpack.c.bf16 %v184_v23, %v184_v23 }
 0x156   :  { %224 = vst.msk [vmem:[%s426_s1 + $0x14] sm:$0xf] %vm218_vm1, %v244_v24  ;;  %v185_v48 = vmul.f32 0.001, %v177_v25 }
 0x157   :  { %225 = vst.msk [vmem:[%s426_s1 + $0x18] sm:$0xf] %vm218_vm1, %v245_v39 }
 0x158   :  { %v246_v26 = vpack.c.bf16 %v185_v48, %v185_v48 }
 0x15a   :  { %226 = vst.msk [vmem:[%s426_s1 + $0x1c] sm:$0xf] %vm218_vm1, %v246_v26 }

</bundles_post_ra>
